<compile_context>
chip_gen: v6e
topology: v6e:2x2x1
jax: 0.10.0
libtpu: 0.0.40
codegen_flags: <defaults>
</compile_context>

<pallas_src>
import jax
import jax.numpy as jnp
from jax.experimental import pallas as pl
from jax.experimental.pallas import tpu as pltpu

HIDDEN = 2
BATCH = 4
SEQ_LEN = 8
NUM_LAYERS = 2
GATES = 4 * HIDDEN  # 8

# Packed-operand row layout (8 lanes wide, every block 8-row aligned, f32):
#   rows  0: 8  WS0    recurrent weights, hidden unit 0 (layer1 rows 0:4, layer0 rows 4:8)
#   rows  8:16  WS1    recurrent weights, hidden unit 1
#   rows 16:24  WX0    layer0->layer1 input weights, hidden unit 0 (rows 4:8 = 0)
#   rows 24:32  WX1    layer0->layer1 input weights, hidden unit 1 (rows 4:8 = 0)
#   rows 32:40  WIH0T  layer0 input weights (rows 0:4 = 0)
#   rows 40:48  BT     folded biases (layer1 rows 0:4, layer0 rows 4:8)
#   rows 48:56  INIT   lanes 0:2 = h init, lanes 2:4 = c init (layer1 top, layer0 bottom)
#   rows 56:60  zeros  top half of the x column window (hits WIH0T's zero rows)
#   rows 60:64  x      as (B, T), appended per call
# g-gate lanes (4:6) of every weight/bias tile are pre-scaled by 2 so that
# tanh(z) = 2*sigmoid(2z) - 1 needs no second full-tile EUP pass.


def lstm_kernel(p_ref, out_ref):
    WS0 = p_ref[0:8, :]
    WS1 = p_ref[8:16, :]
    WX0 = p_ref[16:24, :]
    WX1 = p_ref[24:32, :]
    WIH0T = p_ref[32:40, :]
    BT = p_ref[40:48, :]
    h_init = p_ref[48:56, 0:2]
    c_init = p_ref[48:56, 2:4]
    x_win = p_ref[56:64, :]          # rows 4:8 = x[b, t]; rows 0:4 multiply WIH0T's zeros

    # Combined two-layer state, rows 0:4 = layer 1, rows 4:8 = layer 0.
    h = h_init
    c = c_init

    # Wavefront over the two layers: wave w runs layer0 step w and layer1 step w-1
    # on ONE (8, 8) gate tile -> one sigmoid + one (8, 2) tanh per wave, 9 waves total.
    for w in range(SEQ_LEN + 1):
        gates = BT + h[:, 0:1] * WS0 + h[:, 1:2] * WS1
        # Layer0's fresh hidden state feeds layer1's rows: one sublane half-swap.
        h_swap = jnp.concatenate([h[4:8, :], h[0:4, :]], axis=0)
        gates = gates + h_swap[:, 0:1] * WX0 + h_swap[:, 1:2] * WX1
        if w < SEQ_LEN:
            gates = gates + x_win[:, w:w + 1] * WIH0T        # layer0 input projection
        s = jax.nn.sigmoid(gates)                            # one EUP pass, both layers
        gi = s[:, 0:2]
        gf = s[:, 2:4]
        gg = 2.0 * s[:, 4:6] - 1.0                           # tanh via sigmoid identity
        go = s[:, 6:8]
        c = gf * c + gi * gg
        h = go * jnp.tanh(c)
        if w == 0:
            # Wave 0 has no layer-0 output yet: restore layer 1's initial state.
            h = jnp.concatenate([h_init[0:4, :], h[4:8, :]], axis=0)
            c = jnp.concatenate([c_init[0:4, :], c[4:8, :]], axis=0)
        else:
            out_ref[4 * (w - 1):4 * w, :] = h[0:4, :]        # layer1 output, step w-1


def pack_constants(params, h0, c0):
    """One-time packing of weights/biases/initial state into a (60, 8) f32 block."""
    wih0, whh0, bih0, bhh0, wih1, whh1, bih1, bhh1 = [
        jnp.asarray(p, jnp.float32) for p in params]
    gscale = jnp.ones((GATES,), jnp.float32).at[4:6].set(2.0)   # x2 on the g-gate lanes

    wih0g = wih0.T * gscale                      # (1, 8)
    whh0g = whh0.T * gscale                      # (2, 8)
    whh1g = whh1.T * gscale
    wih1g = wih1.T * gscale
    b0g = (bih0 + bhh0) * gscale                 # (8,)
    b1g = (bih1 + bhh1) * gscale

    def rep4(row):
        return jnp.broadcast_to(jnp.reshape(row, (1, GATES)), (4, GATES))

    z4 = jnp.zeros((4, GATES), jnp.float32)
    ws0 = jnp.concatenate([rep4(whh1g[0]), rep4(whh0g[0])], axis=0)
    ws1 = jnp.concatenate([rep4(whh1g[1]), rep4(whh0g[1])], axis=0)
    wx0 = jnp.concatenate([rep4(wih1g[0]), z4], axis=0)
    wx1 = jnp.concatenate([rep4(wih1g[1]), z4], axis=0)
    wih0t = jnp.concatenate([z4, rep4(wih0g)], axis=0)
    bt = jnp.concatenate([rep4(b1g), rep4(b0g)], axis=0)

    h_init = jnp.concatenate([h0[1], h0[0]], axis=0)       # (8, 2), layer1 on top
    c_init = jnp.concatenate([c0[1], c0[0]], axis=0)
    init = jnp.concatenate([h_init, c_init, jnp.zeros((8, 4), jnp.float32)], axis=1)

    return jnp.concatenate([ws0, ws1, wx0, wx1, wih0t, bt, init, z4],
                           axis=0).astype(jnp.float32)      # (60, 8)


def _forward(packed_const, x):
    x_bt = x.reshape(SEQ_LEN, BATCH).T.astype(jnp.float32)   # (B, T)
    packed = jnp.concatenate([packed_const, x_bt], axis=0)   # (64, 8): single operand
    vmem = pl.BlockSpec(memory_space=pltpu.MemorySpace.VMEM)
    # TODO(synk): with >=2 independent sequences, add a leading "parallel" grid axis
    # (dimension_semantics=("parallel",)) so v7x's second TensorCore is used; a single
    # (4, 2) sequence cannot fill it.
    out2d = pl.pallas_call(
        lstm_kernel,
        out_shape=jax.ShapeDtypeStruct((SEQ_LEN * BATCH, HIDDEN), jnp.float32),
        in_specs=[vmem],
        out_specs=vmem,
    )(packed)
    return out2d.reshape(SEQ_LEN, BATCH, HIDDEN)


lstm_forward = jax.jit(_forward)


def lstm_ref(x, params, h0, c0):
    # Pure-JAX reference of torch.nn.LSTM(1, 2, 2) forward.
    (wih0, whh0, bih0, bhh0, wih1, whh1, bih1, bhh1) = params
    layers = [(wih0, whh0, bih0, bhh0), (wih1, whh1, bih1, bhh1)]
    seq = x
    T = x.shape[0]
    for l, (wih, whh, bih, bhh) in enumerate(layers):
        h, c = h0[l], c0[l]
        outs = []
        for t in range(T):
            gates = seq[t] @ wih.T + h @ whh.T + bih + bhh
            i = jax.nn.sigmoid(gates[:, 0:2])
            f = jax.nn.sigmoid(gates[:, 2:4])
            g = jnp.tanh(gates[:, 4:6])
            o = jax.nn.sigmoid(gates[:, 6:8])
            c = f * c + i * g
            h = o * jnp.tanh(c)
            outs.append(h)
        seq = jnp.stack(outs, axis=0)
    return seq


if __name__ == "__main__":
    key = jax.random.PRNGKey(0)
    ks = jax.random.split(key, 12)

    # Deterministic parameter init, shapes match nn.LSTM(1, 2, num_layers=2).
    scale = 1.0 / jnp.sqrt(jnp.float32(HIDDEN))
    wih0 = jax.random.uniform(ks[0], (4 * HIDDEN, 1), jnp.float32, -scale, scale)
    whh0 = jax.random.uniform(ks[1], (4 * HIDDEN, HIDDEN), jnp.float32, -scale, scale)
    bih0 = jax.random.uniform(ks[2], (4 * HIDDEN,), jnp.float32, -scale, scale)
    bhh0 = jax.random.uniform(ks[3], (4 * HIDDEN,), jnp.float32, -scale, scale)
    wih1 = jax.random.uniform(ks[4], (4 * HIDDEN, HIDDEN), jnp.float32, -scale, scale)
    whh1 = jax.random.uniform(ks[5], (4 * HIDDEN, HIDDEN), jnp.float32, -scale, scale)
    bih1 = jax.random.uniform(ks[6], (4 * HIDDEN,), jnp.float32, -scale, scale)
    bhh1 = jax.random.uniform(ks[7], (4 * HIDDEN,), jnp.float32, -scale, scale)
    params = (wih0, whh0, bih0, bhh0, wih1, whh1, bih1, bhh1)

    # Initial (h, c) like torch.randn(2, 4, hidden_dim).
    h0 = jax.random.normal(ks[8], (NUM_LAYERS, BATCH, HIDDEN), jnp.float32)
    c0 = jax.random.normal(ks[9], (NUM_LAYERS, BATCH, HIDDEN), jnp.float32)

    # Input x: (seq_len, batch, input_size) = (8, 4, 1).
    x = jax.random.normal(ks[10], (SEQ_LEN, BATCH, 1), jnp.float32)

    # Pack once at init (not per call).
    packed_const = jax.block_until_ready(pack_constants(params, h0, c0))

    out = jax.block_until_ready(lstm_forward(packed_const, x))
    ref = lstm_ref(x, params, h0, c0)

    assert out.shape == (SEQ_LEN, BATCH, HIDDEN)
    assert jnp.allclose(out, ref, atol=1e-4, rtol=1e-4), "mismatch vs JAX reference"
    print("KERNEL_OK")
</pallas_src>

<mosaic_0001>
module attributes {stable_mosaic.version = 11 : i64} {
  func.func @lstm_kernel(%arg0: memref<64x8xf32, #tpu.memory_space<vmem>>, %arg1: memref<32x2xf32, #tpu.memory_space<vmem>>) attributes {dimension_semantics = [], scalar_prefetch = 0 : i64, scratch_operands = 0 : i64, tpu.core_type = #tpu.core_type<tc>} {
    %c0 = arith.constant 0 : index
    %c0_0 = arith.constant 0 : index
    %0 = vector.load %arg0[%c0, %c0_0] : memref<64x8xf32, #tpu.memory_space<vmem>>, vector<8x8xf32>
    %c8 = arith.constant 8 : index
    %c0_1 = arith.constant 0 : index
    %1 = vector.load %arg0[%c8, %c0_1] : memref<64x8xf32, #tpu.memory_space<vmem>>, vector<8x8xf32>
    %c16 = arith.constant 16 : index
    %c0_2 = arith.constant 0 : index
    %2 = vector.load %arg0[%c16, %c0_2] : memref<64x8xf32, #tpu.memory_space<vmem>>, vector<8x8xf32>
    %c24 = arith.constant 24 : index
    %c0_3 = arith.constant 0 : index
    %3 = vector.load %arg0[%c24, %c0_3] : memref<64x8xf32, #tpu.memory_space<vmem>>, vector<8x8xf32>
    %c32 = arith.constant 32 : index
    %c0_4 = arith.constant 0 : index
    %4 = vector.load %arg0[%c32, %c0_4] : memref<64x8xf32, #tpu.memory_space<vmem>>, vector<8x8xf32>
    %c40 = arith.constant 40 : index
    %c0_5 = arith.constant 0 : index
    %5 = vector.load %arg0[%c40, %c0_5] : memref<64x8xf32, #tpu.memory_space<vmem>>, vector<8x8xf32>
    %c48 = arith.constant 48 : index
    %c0_6 = arith.constant 0 : index
    %6 = vector.load %arg0[%c48, %c0_6] : memref<64x8xf32, #tpu.memory_space<vmem>>, vector<8x2xf32>
    %c48_7 = arith.constant 48 : index
    %c2 = arith.constant 2 : index
    %7 = vector.load %arg0[%c48_7, %c2] : memref<64x8xf32, #tpu.memory_space<vmem>>, vector<8x2xf32>
    %c56 = arith.constant 56 : index
    %c0_8 = arith.constant 0 : index
    %8 = vector.load %arg0[%c56, %c0_8] : memref<64x8xf32, #tpu.memory_space<vmem>>, vector<8x8xf32>
    %9 = vector.extract_strided_slice %6 {offsets = [0, 0], sizes = [8, 1], strides = [1, 1]} : vector<8x2xf32> to vector<8x1xf32>
    %10 = vector.broadcast %9 : vector<8x1xf32> to vector<8x8xf32>
    %11 = arith.mulf %10, %0 : vector<8x8xf32>
    %12 = arith.addf %5, %11 : vector<8x8xf32>
    %13 = vector.extract_strided_slice %6 {offsets = [0, 1], sizes = [8, 1], strides = [1, 1]} : vector<8x2xf32> to vector<8x1xf32>
    %14 = vector.broadcast %13 : vector<8x1xf32> to vector<8x8xf32>
    %15 = arith.mulf %14, %1 : vector<8x8xf32>
    %16 = arith.addf %12, %15 : vector<8x8xf32>
    %17 = vector.extract_strided_slice %6 {offsets = [4, 0], sizes = [4, 2], strides = [1, 1]} : vector<8x2xf32> to vector<4x2xf32>
    %18 = vector.extract_strided_slice %6 {offsets = [0, 0], sizes = [4, 2], strides = [1, 1]} : vector<8x2xf32> to vector<4x2xf32>
    %19 = tpu.concatenate %17, %18 in 0 : vector<4x2xf32>, vector<4x2xf32> -> vector<8x2xf32>
    %20 = vector.extract_strided_slice %19 {offsets = [0, 0], sizes = [8, 1], strides = [1, 1]} : vector<8x2xf32> to vector<8x1xf32>
    %21 = vector.broadcast %20 : vector<8x1xf32> to vector<8x8xf32>
    %22 = arith.mulf %21, %2 : vector<8x8xf32>
    %23 = arith.addf %16, %22 : vector<8x8xf32>
    %24 = vector.extract_strided_slice %19 {offsets = [0, 1], sizes = [8, 1], strides = [1, 1]} : vector<8x2xf32> to vector<8x1xf32>
    %25 = vector.broadcast %24 : vector<8x1xf32> to vector<8x8xf32>
    %26 = arith.mulf %25, %3 : vector<8x8xf32>
    %27 = arith.addf %23, %26 : vector<8x8xf32>
    %28 = vector.extract_strided_slice %8 {offsets = [0, 0], sizes = [8, 1], strides = [1, 1]} : vector<8x8xf32> to vector<8x1xf32>
    %29 = vector.broadcast %28 : vector<8x1xf32> to vector<8x8xf32>
    %30 = arith.mulf %29, %4 : vector<8x8xf32>
    %31 = arith.addf %27, %30 : vector<8x8xf32>
    %32 = arith.negf %31 : vector<8x8xf32>
    %33 = math.exp %32 : vector<8x8xf32>
    %cst = arith.constant 1.000000e+00 : f32
    %34 = vector.broadcast %cst : f32 to vector<8x8xf32>
    %35 = arith.addf %34, %33 : vector<8x8xf32>
    %36 = arith.divf %34, %35 : vector<8x8xf32>
    %37 = vector.extract_strided_slice %36 {offsets = [0, 0], sizes = [8, 2], strides = [1, 1]} : vector<8x8xf32> to vector<8x2xf32>
    %38 = vector.extract_strided_slice %36 {offsets = [0, 2], sizes = [8, 2], strides = [1, 1]} : vector<8x8xf32> to vector<8x2xf32>
    %39 = vector.extract_strided_slice %36 {offsets = [0, 4], sizes = [8, 2], strides = [1, 1]} : vector<8x8xf32> to vector<8x2xf32>
    %cst_9 = arith.constant 2.000000e+00 : f32
    %40 = vector.broadcast %cst_9 : f32 to vector<8x2xf32>
    %41 = arith.mulf %40, %39 : vector<8x2xf32>
    %cst_10 = arith.constant 1.000000e+00 : f32
    %42 = vector.broadcast %cst_10 : f32 to vector<8x2xf32>
    %43 = arith.subf %41, %42 : vector<8x2xf32>
    %44 = vector.extract_strided_slice %36 {offsets = [0, 6], sizes = [8, 2], strides = [1, 1]} : vector<8x8xf32> to vector<8x2xf32>
    %45 = arith.mulf %38, %7 : vector<8x2xf32>
    %46 = arith.mulf %37, %43 : vector<8x2xf32>
    %47 = arith.addf %45, %46 : vector<8x2xf32>
    %48 = math.tanh %47 : vector<8x2xf32>
    %49 = arith.mulf %44, %48 : vector<8x2xf32>
    %50 = vector.extract_strided_slice %6 {offsets = [0, 0], sizes = [4, 2], strides = [1, 1]} : vector<8x2xf32> to vector<4x2xf32>
    %51 = vector.extract_strided_slice %49 {offsets = [4, 0], sizes = [4, 2], strides = [1, 1]} : vector<8x2xf32> to vector<4x2xf32>
    %52 = tpu.concatenate %50, %51 in 0 : vector<4x2xf32>, vector<4x2xf32> -> vector<8x2xf32>
    %53 = vector.extract_strided_slice %7 {offsets = [0, 0], sizes = [4, 2], strides = [1, 1]} : vector<8x2xf32> to vector<4x2xf32>
    %54 = vector.extract_strided_slice %47 {offsets = [4, 0], sizes = [4, 2], strides = [1, 1]} : vector<8x2xf32> to vector<4x2xf32>
    %55 = tpu.concatenate %53, %54 in 0 : vector<4x2xf32>, vector<4x2xf32> -> vector<8x2xf32>
    %56 = vector.extract_strided_slice %52 {offsets = [0, 0], sizes = [8, 1], strides = [1, 1]} : vector<8x2xf32> to vector<8x1xf32>
    %57 = vector.broadcast %56 : vector<8x1xf32> to vector<8x8xf32>
    %58 = arith.mulf %57, %0 : vector<8x8xf32>
    %59 = arith.addf %5, %58 : vector<8x8xf32>
    %60 = vector.extract_strided_slice %52 {offsets = [0, 1], sizes = [8, 1], strides = [1, 1]} : vector<8x2xf32> to vector<8x1xf32>
    %61 = vector.broadcast %60 : vector<8x1xf32> to vector<8x8xf32>
    %62 = arith.mulf %61, %1 : vector<8x8xf32>
    %63 = arith.addf %59, %62 : vector<8x8xf32>
    %64 = vector.extract_strided_slice %52 {offsets = [4, 0], sizes = [4, 2], strides = [1, 1]} : vector<8x2xf32> to vector<4x2xf32>
    %65 = vector.extract_strided_slice %52 {offsets = [0, 0], sizes = [4, 2], strides = [1, 1]} : vector<8x2xf32> to vector<4x2xf32>
    %66 = tpu.concatenate %64, %65 in 0 : vector<4x2xf32>, vector<4x2xf32> -> vector<8x2xf32>
    %67 = vector.extract_strided_slice %66 {offsets = [0, 0], sizes = [8, 1], strides = [1, 1]} : vector<8x2xf32> to vector<8x1xf32>
    %68 = vector.broadcast %67 : vector<8x1xf32> to vector<8x8xf32>
    %69 = arith.mulf %68, %2 : vector<8x8xf32>
    %70 = arith.addf %63, %69 : vector<8x8xf32>
    %71 = vector.extract_strided_slice %66 {offsets = [0, 1], sizes = [8, 1], strides = [1, 1]} : vector<8x2xf32> to vector<8x1xf32>
    %72 = vector.broadcast %71 : vector<8x1xf32> to vector<8x8xf32>
    %73 = arith.mulf %72, %3 : vector<8x8xf32>
    %74 = arith.addf %70, %73 : vector<8x8xf32>
    %75 = vector.extract_strided_slice %8 {offsets = [0, 1], sizes = [8, 1], strides = [1, 1]} : vector<8x8xf32> to vector<8x1xf32>
    %76 = vector.broadcast %75 : vector<8x1xf32> to vector<8x8xf32>
    %77 = arith.mulf %76, %4 : vector<8x8xf32>
    %78 = arith.addf %74, %77 : vector<8x8xf32>
    %79 = arith.negf %78 : vector<8x8xf32>
    %80 = math.exp %79 : vector<8x8xf32>
    %cst_11 = arith.constant 1.000000e+00 : f32
    %81 = vector.broadcast %cst_11 : f32 to vector<8x8xf32>
    %82 = arith.addf %81, %80 : vector<8x8xf32>
    %83 = arith.divf %81, %82 : vector<8x8xf32>
    %84 = vector.extract_strided_slice %83 {offsets = [0, 0], sizes = [8, 2], strides = [1, 1]} : vector<8x8xf32> to vector<8x2xf32>
    %85 = vector.extract_strided_slice %83 {offsets = [0, 2], sizes = [8, 2], strides = [1, 1]} : vector<8x8xf32> to vector<8x2xf32>
    %86 = vector.extract_strided_slice %83 {offsets = [0, 4], sizes = [8, 2], strides = [1, 1]} : vector<8x8xf32> to vector<8x2xf32>
    %cst_12 = arith.constant 2.000000e+00 : f32
    %87 = vector.broadcast %cst_12 : f32 to vector<8x2xf32>
    %88 = arith.mulf %87, %86 : vector<8x2xf32>
    %cst_13 = arith.constant 1.000000e+00 : f32
    %89 = vector.broadcast %cst_13 : f32 to vector<8x2xf32>
    %90 = arith.subf %88, %89 : vector<8x2xf32>
    %91 = vector.extract_strided_slice %83 {offsets = [0, 6], sizes = [8, 2], strides = [1, 1]} : vector<8x8xf32> to vector<8x2xf32>
    %92 = arith.mulf %85, %55 : vector<8x2xf32>
    %93 = arith.mulf %84, %90 : vector<8x2xf32>
    %94 = arith.addf %92, %93 : vector<8x2xf32>
    %95 = math.tanh %94 : vector<8x2xf32>
    %96 = arith.mulf %91, %95 : vector<8x2xf32>
    %97 = vector.extract_strided_slice %96 {offsets = [0, 0], sizes = [4, 2], strides = [1, 1]} : vector<8x2xf32> to vector<4x2xf32>
    %c0_14 = arith.constant 0 : index
    %c0_15 = arith.constant 0 : index
    %98 = vector.load %arg1[%c0_14, %c0_15] : memref<32x2xf32, #tpu.memory_space<vmem>>, vector<4x2xf32>
    tpu.vector_store %arg1[%c0_14, %c0_15], %97 {strides = array<i32>} : memref<32x2xf32, #tpu.memory_space<vmem>>, vector<4x2xf32>,
    %99 = vector.extract_strided_slice %96 {offsets = [0, 0], sizes = [8, 1], strides = [1, 1]} : vector<8x2xf32> to vector<8x1xf32>
    %100 = vector.broadcast %99 : vector<8x1xf32> to vector<8x8xf32>
    %101 = arith.mulf %100, %0 : vector<8x8xf32>
    %102 = arith.addf %5, %101 : vector<8x8xf32>
    %103 = vector.extract_strided_slice %96 {offsets = [0, 1], sizes = [8, 1], strides = [1, 1]} : vector<8x2xf32> to vector<8x1xf32>
    %104 = vector.broadcast %103 : vector<8x1xf32> to vector<8x8xf32>
    %105 = arith.mulf %104, %1 : vector<8x8xf32>
    %106 = arith.addf %102, %105 : vector<8x8xf32>
    %107 = vector.extract_strided_slice %96 {offsets = [4, 0], sizes = [4, 2], strides = [1, 1]} : vector<8x2xf32> to vector<4x2xf32>
    %108 = vector.extract_strided_slice %96 {offsets = [0, 0], sizes = [4, 2], strides = [1, 1]} : vector<8x2xf32> to vector<4x2xf32>
    %109 = tpu.concatenate %107, %108 in 0 : vector<4x2xf32>, vector<4x2xf32> -> vector<8x2xf32>
    %110 = vector.extract_strided_slice %109 {offsets = [0, 0], sizes = [8, 1], strides = [1, 1]} : vector<8x2xf32> to vector<8x1xf32>
    %111 = vector.broadcast %110 : vector<8x1xf32> to vector<8x8xf32>
    %112 = arith.mulf %111, %2 : vector<8x8xf32>
    %113 = arith.addf %106, %112 : vector<8x8xf32>
    %114 = vector.extract_strided_slice %109 {offsets = [0, 1], sizes = [8, 1], strides = [1, 1]} : vector<8x2xf32> to vector<8x1xf32>
    %115 = vector.broadcast %114 : vector<8x1xf32> to vector<8x8xf32>
    %116 = arith.mulf %115, %3 : vector<8x8xf32>
    %117 = arith.addf %113, %116 : vector<8x8xf32>
    %118 = vector.extract_strided_slice %8 {offsets = [0, 2], sizes = [8, 1], strides = [1, 1]} : vector<8x8xf32> to vector<8x1xf32>
    %119 = vector.broadcast %118 : vector<8x1xf32> to vector<8x8xf32>
    %120 = arith.mulf %119, %4 : vector<8x8xf32>
    %121 = arith.addf %117, %120 : vector<8x8xf32>
    %122 = arith.negf %121 : vector<8x8xf32>
    %123 = math.exp %122 : vector<8x8xf32>
    %cst_16 = arith.constant 1.000000e+00 : f32
    %124 = vector.broadcast %cst_16 : f32 to vector<8x8xf32>
    %125 = arith.addf %124, %123 : vector<8x8xf32>
    %126 = arith.divf %124, %125 : vector<8x8xf32>
    %127 = vector.extract_strided_slice %126 {offsets = [0, 0], sizes = [8, 2], strides = [1, 1]} : vector<8x8xf32> to vector<8x2xf32>
    %128 = vector.extract_strided_slice %126 {offsets = [0, 2], sizes = [8, 2], strides = [1, 1]} : vector<8x8xf32> to vector<8x2xf32>
    %129 = vector.extract_strided_slice %126 {offsets = [0, 4], sizes = [8, 2], strides = [1, 1]} : vector<8x8xf32> to vector<8x2xf32>
    %cst_17 = arith.constant 2.000000e+00 : f32
    %130 = vector.broadcast %cst_17 : f32 to vector<8x2xf32>
    %131 = arith.mulf %130, %129 : vector<8x2xf32>
    %cst_18 = arith.constant 1.000000e+00 : f32
    %132 = vector.broadcast %cst_18 : f32 to vector<8x2xf32>
    %133 = arith.subf %131, %132 : vector<8x2xf32>
    %134 = vector.extract_strided_slice %126 {offsets = [0, 6], sizes = [8, 2], strides = [1, 1]} : vector<8x8xf32> to vector<8x2xf32>
    %135 = arith.mulf %128, %94 : vector<8x2xf32>
    %136 = arith.mulf %127, %133 : vector<8x2xf32>
    %137 = arith.addf %135, %136 : vector<8x2xf32>
    %138 = math.tanh %137 : vector<8x2xf32>
    %139 = arith.mulf %134, %138 : vector<8x2xf32>
    %140 = vector.extract_strided_slice %139 {offsets = [0, 0], sizes = [4, 2], strides = [1, 1]} : vector<8x2xf32> to vector<4x2xf32>
    %c4 = arith.constant 4 : index
    %c0_19 = arith.constant 0 : index
    %141 = vector.load %arg1[%c4, %c0_19] : memref<32x2xf32, #tpu.memory_space<vmem>>, vector<4x2xf32>
    tpu.vector_store %arg1[%c4, %c0_19], %140 {strides = array<i32>} : memref<32x2xf32, #tpu.memory_space<vmem>>, vector<4x2xf32>,
    %142 = vector.extract_strided_slice %139 {offsets = [0, 0], sizes = [8, 1], strides = [1, 1]} : vector<8x2xf32> to vector<8x1xf32>
    %143 = vector.broadcast %142 : vector<8x1xf32> to vector<8x8xf32>
    %144 = arith.mulf %143, %0 : vector<8x8xf32>
    %145 = arith.addf %5, %144 : vector<8x8xf32>
    %146 = vector.extract_strided_slice %139 {offsets = [0, 1], sizes = [8, 1], strides = [1, 1]} : vector<8x2xf32> to vector<8x1xf32>
    %147 = vector.broadcast %146 : vector<8x1xf32> to vector<8x8xf32>
    %148 = arith.mulf %147, %1 : vector<8x8xf32>
    %149 = arith.addf %145, %148 : vector<8x8xf32>
    %150 = vector.extract_strided_slice %139 {offsets = [4, 0], sizes = [4, 2], strides = [1, 1]} : vector<8x2xf32> to vector<4x2xf32>
    %151 = vector.extract_strided_slice %139 {offsets = [0, 0], sizes = [4, 2], strides = [1, 1]} : vector<8x2xf32> to vector<4x2xf32>
    %152 = tpu.concatenate %150, %151 in 0 : vector<4x2xf32>, vector<4x2xf32> -> vector<8x2xf32>
    %153 = vector.extract_strided_slice %152 {offsets = [0, 0], sizes = [8, 1], strides = [1, 1]} : vector<8x2xf32> to vector<8x1xf32>
    %154 = vector.broadcast %153 : vector<8x1xf32> to vector<8x8xf32>
    %155 = arith.mulf %154, %2 : vector<8x8xf32>
    %156 = arith.addf %149, %155 : vector<8x8xf32>
    %157 = vector.extract_strided_slice %152 {offsets = [0, 1], sizes = [8, 1], strides = [1, 1]} : vector<8x2xf32> to vector<8x1xf32>
    %158 = vector.broadcast %157 : vector<8x1xf32> to vector<8x8xf32>
    %159 = arith.mulf %158, %3 : vector<8x8xf32>
    %160 = arith.addf %156, %159 : vector<8x8xf32>
    %161 = vector.extract_strided_slice %8 {offsets = [0, 3], sizes = [8, 1], strides = [1, 1]} : vector<8x8xf32> to vector<8x1xf32>
    %162 = vector.broadcast %161 : vector<8x1xf32> to vector<8x8xf32>
    %163 = arith.mulf %162, %4 : vector<8x8xf32>
    %164 = arith.addf %160, %163 : vector<8x8xf32>
    %165 = arith.negf %164 : vector<8x8xf32>
    %166 = math.exp %165 : vector<8x8xf32>
    %cst_20 = arith.constant 1.000000e+00 : f32
    %167 = vector.broadcast %cst_20 : f32 to vector<8x8xf32>
    %168 = arith.addf %167, %166 : vector<8x8xf32>
    %169 = arith.divf %167, %168 : vector<8x8xf32>
    %170 = vector.extract_strided_slice %169 {offsets = [0, 0], sizes = [8, 2], strides = [1, 1]} : vector<8x8xf32> to vector<8x2xf32>
    %171 = vector.extract_strided_slice %169 {offsets = [0, 2], sizes = [8, 2], strides = [1, 1]} : vector<8x8xf32> to vector<8x2xf32>
    %172 = vector.extract_strided_slice %169 {offsets = [0, 4], sizes = [8, 2], strides = [1, 1]} : vector<8x8xf32> to vector<8x2xf32>
    %cst_21 = arith.constant 2.000000e+00 : f32
    %173 = vector.broadcast %cst_21 : f32 to vector<8x2xf32>
    %174 = arith.mulf %173, %172 : vector<8x2xf32>
    %cst_22 = arith.constant 1.000000e+00 : f32
    %175 = vector.broadcast %cst_22 : f32 to vector<8x2xf32>
    %176 = arith.subf %174, %175 : vector<8x2xf32>
    %177 = vector.extract_strided_slice %169 {offsets = [0, 6], sizes = [8, 2], strides = [1, 1]} : vector<8x8xf32> to vector<8x2xf32>
    %178 = arith.mulf %171, %137 : vector<8x2xf32>
    %179 = arith.mulf %170, %176 : vector<8x2xf32>
    %180 = arith.addf %178, %179 : vector<8x2xf32>
    %181 = math.tanh %180 : vector<8x2xf32>
    %182 = arith.mulf %177, %181 : vector<8x2xf32>
    %183 = vector.extract_strided_slice %182 {offsets = [0, 0], sizes = [4, 2], strides = [1, 1]} : vector<8x2xf32> to vector<4x2xf32>
    %c8_23 = arith.constant 8 : index
    %c0_24 = arith.constant 0 : index
    %184 = vector.load %arg1[%c8_23, %c0_24] : memref<32x2xf32, #tpu.memory_space<vmem>>, vector<4x2xf32>
    tpu.vector_store %arg1[%c8_23, %c0_24], %183 {strides = array<i32>} : memref<32x2xf32, #tpu.memory_space<vmem>>, vector<4x2xf32>,
    %185 = vector.extract_strided_slice %182 {offsets = [0, 0], sizes = [8, 1], strides = [1, 1]} : vector<8x2xf32> to vector<8x1xf32>
    %186 = vector.broadcast %185 : vector<8x1xf32> to vector<8x8xf32>
    %187 = arith.mulf %186, %0 : vector<8x8xf32>
    %188 = arith.addf %5, %187 : vector<8x8xf32>
    %189 = vector.extract_strided_slice %182 {offsets = [0, 1], sizes = [8, 1], strides = [1, 1]} : vector<8x2xf32> to vector<8x1xf32>
    %190 = vector.broadcast %189 : vector<8x1xf32> to vector<8x8xf32>
    %191 = arith.mulf %190, %1 : vector<8x8xf32>
    %192 = arith.addf %188, %191 : vector<8x8xf32>
    %193 = vector.extract_strided_slice %182 {offsets = [4, 0], sizes = [4, 2], strides = [1, 1]} : vector<8x2xf32> to vector<4x2xf32>
    %194 = vector.extract_strided_slice %182 {offsets = [0, 0], sizes = [4, 2], strides = [1, 1]} : vector<8x2xf32> to vector<4x2xf32>
    %195 = tpu.concatenate %193, %194 in 0 : vector<4x2xf32>, vector<4x2xf32> -> vector<8x2xf32>
    %196 = vector.extract_strided_slice %195 {offsets = [0, 0], sizes = [8, 1], strides = [1, 1]} : vector<8x2xf32> to vector<8x1xf32>
    %197 = vector.broadcast %196 : vector<8x1xf32> to vector<8x8xf32>
    %198 = arith.mulf %197, %2 : vector<8x8xf32>
    %199 = arith.addf %192, %198 : vector<8x8xf32>
    %200 = vector.extract_strided_slice %195 {offsets = [0, 1], sizes = [8, 1], strides = [1, 1]} : vector<8x2xf32> to vector<8x1xf32>
    %201 = vector.broadcast %200 : vector<8x1xf32> to vector<8x8xf32>
    %202 = arith.mulf %201, %3 : vector<8x8xf32>
    %203 = arith.addf %199, %202 : vector<8x8xf32>
    %204 = vector.extract_strided_slice %8 {offsets = [0, 4], sizes = [8, 1], strides = [1, 1]} : vector<8x8xf32> to vector<8x1xf32>
    %205 = vector.broadcast %204 : vector<8x1xf32> to vector<8x8xf32>
    %206 = arith.mulf %205, %4 : vector<8x8xf32>
    %207 = arith.addf %203, %206 : vector<8x8xf32>
    %208 = arith.negf %207 : vector<8x8xf32>
    %209 = math.exp %208 : vector<8x8xf32>
    %cst_25 = arith.constant 1.000000e+00 : f32
    %210 = vector.broadcast %cst_25 : f32 to vector<8x8xf32>
    %211 = arith.addf %210, %209 : vector<8x8xf32>
    %212 = arith.divf %210, %211 : vector<8x8xf32>
    %213 = vector.extract_strided_slice %212 {offsets = [0, 0], sizes = [8, 2], strides = [1, 1]} : vector<8x8xf32> to vector<8x2xf32>
    %214 = vector.extract_strided_slice %212 {offsets = [0, 2], sizes = [8, 2], strides = [1, 1]} : vector<8x8xf32> to vector<8x2xf32>
    %215 = vector.extract_strided_slice %212 {offsets = [0, 4], sizes = [8, 2], strides = [1, 1]} : vector<8x8xf32> to vector<8x2xf32>
    %cst_26 = arith.constant 2.000000e+00 : f32
    %216 = vector.broadcast %cst_26 : f32 to vector<8x2xf32>
    %217 = arith.mulf %216, %215 : vector<8x2xf32>
    %cst_27 = arith.constant 1.000000e+00 : f32
    %218 = vector.broadcast %cst_27 : f32 to vector<8x2xf32>
    %219 = arith.subf %217, %218 : vector<8x2xf32>
    %220 = vector.extract_strided_slice %212 {offsets = [0, 6], sizes = [8, 2], strides = [1, 1]} : vector<8x8xf32> to vector<8x2xf32>
    %221 = arith.mulf %214, %180 : vector<8x2xf32>
    %222 = arith.mulf %213, %219 : vector<8x2xf32>
    %223 = arith.addf %221, %222 : vector<8x2xf32>
    %224 = math.tanh %223 : vector<8x2xf32>
    %225 = arith.mulf %220, %224 : vector<8x2xf32>
    %226 = vector.extract_strided_slice %225 {offsets = [0, 0], sizes = [4, 2], strides = [1, 1]} : vector<8x2xf32> to vector<4x2xf32>
    %c12 = arith.constant 12 : index
    %c0_28 = arith.constant 0 : index
    %227 = vector.load %arg1[%c12, %c0_28] : memref<32x2xf32, #tpu.memory_space<vmem>>, vector<4x2xf32>
    tpu.vector_store %arg1[%c12, %c0_28], %226 {strides = array<i32>} : memref<32x2xf32, #tpu.memory_space<vmem>>, vector<4x2xf32>,
    %228 = vector.extract_strided_slice %225 {offsets = [0, 0], sizes = [8, 1], strides = [1, 1]} : vector<8x2xf32> to vector<8x1xf32>
    %229 = vector.broadcast %228 : vector<8x1xf32> to vector<8x8xf32>
    %230 = arith.mulf %229, %0 : vector<8x8xf32>
    %231 = arith.addf %5, %230 : vector<8x8xf32>
    %232 = vector.extract_strided_slice %225 {offsets = [0, 1], sizes = [8, 1], strides = [1, 1]} : vector<8x2xf32> to vector<8x1xf32>
    %233 = vector.broadcast %232 : vector<8x1xf32> to vector<8x8xf32>
    %234 = arith.mulf %233, %1 : vector<8x8xf32>
    %235 = arith.addf %231, %234 : vector<8x8xf32>
    %236 = vector.extract_strided_slice %225 {offsets = [4, 0], sizes = [4, 2], strides = [1, 1]} : vector<8x2xf32> to vector<4x2xf32>
    %237 = vector.extract_strided_slice %225 {offsets = [0, 0], sizes = [4, 2], strides = [1, 1]} : vector<8x2xf32> to vector<4x2xf32>
    %238 = tpu.concatenate %236, %237 in 0 : vector<4x2xf32>, vector<4x2xf32> -> vector<8x2xf32>
    %239 = vector.extract_strided_slice %238 {offsets = [0, 0], sizes = [8, 1], strides = [1, 1]} : vector<8x2xf32> to vector<8x1xf32>
    %240 = vector.broadcast %239 : vector<8x1xf32> to vector<8x8xf32>
    %241 = arith.mulf %240, %2 : vector<8x8xf32>
    %242 = arith.addf %235, %241 : vector<8x8xf32>
    %243 = vector.extract_strided_slice %238 {offsets = [0, 1], sizes = [8, 1], strides = [1, 1]} : vector<8x2xf32> to vector<8x1xf32>
    %244 = vector.broadcast %243 : vector<8x1xf32> to vector<8x8xf32>
    %245 = arith.mulf %244, %3 : vector<8x8xf32>
    %246 = arith.addf %242, %245 : vector<8x8xf32>
    %247 = vector.extract_strided_slice %8 {offsets = [0, 5], sizes = [8, 1], strides = [1, 1]} : vector<8x8xf32> to vector<8x1xf32>
    %248 = vector.broadcast %247 : vector<8x1xf32> to vector<8x8xf32>
    %249 = arith.mulf %248, %4 : vector<8x8xf32>
    %250 = arith.addf %246, %249 : vector<8x8xf32>
    %251 = arith.negf %250 : vector<8x8xf32>
    %252 = math.exp %251 : vector<8x8xf32>
    %cst_29 = arith.constant 1.000000e+00 : f32
    %253 = vector.broadcast %cst_29 : f32 to vector<8x8xf32>
    %254 = arith.addf %253, %252 : vector<8x8xf32>
    %255 = arith.divf %253, %254 : vector<8x8xf32>
    %256 = vector.extract_strided_slice %255 {offsets = [0, 0], sizes = [8, 2], strides = [1, 1]} : vector<8x8xf32> to vector<8x2xf32>
    %257 = vector.extract_strided_slice %255 {offsets = [0, 2], sizes = [8, 2], strides = [1, 1]} : vector<8x8xf32> to vector<8x2xf32>
    %258 = vector.extract_strided_slice %255 {offsets = [0, 4], sizes = [8, 2], strides = [1, 1]} : vector<8x8xf32> to vector<8x2xf32>
    %cst_30 = arith.constant 2.000000e+00 : f32
    %259 = vector.broadcast %cst_30 : f32 to vector<8x2xf32>
    %260 = arith.mulf %259, %258 : vector<8x2xf32>
    %cst_31 = arith.constant 1.000000e+00 : f32
    %261 = vector.broadcast %cst_31 : f32 to vector<8x2xf32>
    %262 = arith.subf %260, %261 : vector<8x2xf32>
    %263 = vector.extract_strided_slice %255 {offsets = [0, 6], sizes = [8, 2], strides = [1, 1]} : vector<8x8xf32> to vector<8x2xf32>
    %264 = arith.mulf %257, %223 : vector<8x2xf32>
    %265 = arith.mulf %256, %262 : vector<8x2xf32>
    %266 = arith.addf %264, %265 : vector<8x2xf32>
    %267 = math.tanh %266 : vector<8x2xf32>
    %268 = arith.mulf %263, %267 : vector<8x2xf32>
    %269 = vector.extract_strided_slice %268 {offsets = [0, 0], sizes = [4, 2], strides = [1, 1]} : vector<8x2xf32> to vector<4x2xf32>
    %c16_32 = arith.constant 16 : index
    %c0_33 = arith.constant 0 : index
    %270 = vector.load %arg1[%c16_32, %c0_33] : memref<32x2xf32, #tpu.memory_space<vmem>>, vector<4x2xf32>
    tpu.vector_store %arg1[%c16_32, %c0_33], %269 {strides = array<i32>} : memref<32x2xf32, #tpu.memory_space<vmem>>, vector<4x2xf32>,
    %271 = vector.extract_strided_slice %268 {offsets = [0, 0], sizes = [8, 1], strides = [1, 1]} : vector<8x2xf32> to vector<8x1xf32>
    %272 = vector.broadcast %271 : vector<8x1xf32> to vector<8x8xf32>
    %273 = arith.mulf %272, %0 : vector<8x8xf32>
    %274 = arith.addf %5, %273 : vector<8x8xf32>
    %275 = vector.extract_strided_slice %268 {offsets = [0, 1], sizes = [8, 1], strides = [1, 1]} : vector<8x2xf32> to vector<8x1xf32>
    %276 = vector.broadcast %275 : vector<8x1xf32> to vector<8x8xf32>
    %277 = arith.mulf %276, %1 : vector<8x8xf32>
    %278 = arith.addf %274, %277 : vector<8x8xf32>
    %279 = vector.extract_strided_slice %268 {offsets = [4, 0], sizes = [4, 2], strides = [1, 1]} : vector<8x2xf32> to vector<4x2xf32>
    %280 = vector.extract_strided_slice %268 {offsets = [0, 0], sizes = [4, 2], strides = [1, 1]} : vector<8x2xf32> to vector<4x2xf32>
    %281 = tpu.concatenate %279, %280 in 0 : vector<4x2xf32>, vector<4x2xf32> -> vector<8x2xf32>
    %282 = vector.extract_strided_slice %281 {offsets = [0, 0], sizes = [8, 1], strides = [1, 1]} : vector<8x2xf32> to vector<8x1xf32>
    %283 = vector.broadcast %282 : vector<8x1xf32> to vector<8x8xf32>
    %284 = arith.mulf %283, %2 : vector<8x8xf32>
    %285 = arith.addf %278, %284 : vector<8x8xf32>
    %286 = vector.extract_strided_slice %281 {offsets = [0, 1], sizes = [8, 1], strides = [1, 1]} : vector<8x2xf32> to vector<8x1xf32>
    %287 = vector.broadcast %286 : vector<8x1xf32> to vector<8x8xf32>
    %288 = arith.mulf %287, %3 : vector<8x8xf32>
    %289 = arith.addf %285, %288 : vector<8x8xf32>
    %290 = vector.extract_strided_slice %8 {offsets = [0, 6], sizes = [8, 1], strides = [1, 1]} : vector<8x8xf32> to vector<8x1xf32>
    %291 = vector.broadcast %290 : vector<8x1xf32> to vector<8x8xf32>
    %292 = arith.mulf %291, %4 : vector<8x8xf32>
    %293 = arith.addf %289, %292 : vector<8x8xf32>
    %294 = arith.negf %293 : vector<8x8xf32>
    %295 = math.exp %294 : vector<8x8xf32>
    %cst_34 = arith.constant 1.000000e+00 : f32
    %296 = vector.broadcast %cst_34 : f32 to vector<8x8xf32>
    %297 = arith.addf %296, %295 : vector<8x8xf32>
    %298 = arith.divf %296, %297 : vector<8x8xf32>
    %299 = vector.extract_strided_slice %298 {offsets = [0, 0], sizes = [8, 2], strides = [1, 1]} : vector<8x8xf32> to vector<8x2xf32>
    %300 = vector.extract_strided_slice %298 {offsets = [0, 2], sizes = [8, 2], strides = [1, 1]} : vector<8x8xf32> to vector<8x2xf32>
    %301 = vector.extract_strided_slice %298 {offsets = [0, 4], sizes = [8, 2], strides = [1, 1]} : vector<8x8xf32> to vector<8x2xf32>
    %cst_35 = arith.constant 2.000000e+00 : f32
    %302 = vector.broadcast %cst_35 : f32 to vector<8x2xf32>
    %303 = arith.mulf %302, %301 : vector<8x2xf32>
    %cst_36 = arith.constant 1.000000e+00 : f32
    %304 = vector.broadcast %cst_36 : f32 to vector<8x2xf32>
    %305 = arith.subf %303, %304 : vector<8x2xf32>
    %306 = vector.extract_strided_slice %298 {offsets = [0, 6], sizes = [8, 2], strides = [1, 1]} : vector<8x8xf32> to vector<8x2xf32>
    %307 = arith.mulf %300, %266 : vector<8x2xf32>
    %308 = arith.mulf %299, %305 : vector<8x2xf32>
    %309 = arith.addf %307, %308 : vector<8x2xf32>
    %310 = math.tanh %309 : vector<8x2xf32>
    %311 = arith.mulf %306, %310 : vector<8x2xf32>
    %312 = vector.extract_strided_slice %311 {offsets = [0, 0], sizes = [4, 2], strides = [1, 1]} : vector<8x2xf32> to vector<4x2xf32>
    %c20 = arith.constant 20 : index
    %c0_37 = arith.constant 0 : index
    %313 = vector.load %arg1[%c20, %c0_37] : memref<32x2xf32, #tpu.memory_space<vmem>>, vector<4x2xf32>
    tpu.vector_store %arg1[%c20, %c0_37], %312 {strides = array<i32>} : memref<32x2xf32, #tpu.memory_space<vmem>>, vector<4x2xf32>,
    %314 = vector.extract_strided_slice %311 {offsets = [0, 0], sizes = [8, 1], strides = [1, 1]} : vector<8x2xf32> to vector<8x1xf32>
    %315 = vector.broadcast %314 : vector<8x1xf32> to vector<8x8xf32>
    %316 = arith.mulf %315, %0 : vector<8x8xf32>
    %317 = arith.addf %5, %316 : vector<8x8xf32>
    %318 = vector.extract_strided_slice %311 {offsets = [0, 1], sizes = [8, 1], strides = [1, 1]} : vector<8x2xf32> to vector<8x1xf32>
    %319 = vector.broadcast %318 : vector<8x1xf32> to vector<8x8xf32>
    %320 = arith.mulf %319, %1 : vector<8x8xf32>
    %321 = arith.addf %317, %320 : vector<8x8xf32>
    %322 = vector.extract_strided_slice %311 {offsets = [4, 0], sizes = [4, 2], strides = [1, 1]} : vector<8x2xf32> to vector<4x2xf32>
    %323 = vector.extract_strided_slice %311 {offsets = [0, 0], sizes = [4, 2], strides = [1, 1]} : vector<8x2xf32> to vector<4x2xf32>
    %324 = tpu.concatenate %322, %323 in 0 : vector<4x2xf32>, vector<4x2xf32> -> vector<8x2xf32>
    %325 = vector.extract_strided_slice %324 {offsets = [0, 0], sizes = [8, 1], strides = [1, 1]} : vector<8x2xf32> to vector<8x1xf32>
    %326 = vector.broadcast %325 : vector<8x1xf32> to vector<8x8xf32>
    %327 = arith.mulf %326, %2 : vector<8x8xf32>
    %328 = arith.addf %321, %327 : vector<8x8xf32>
    %329 = vector.extract_strided_slice %324 {offsets = [0, 1], sizes = [8, 1], strides = [1, 1]} : vector<8x2xf32> to vector<8x1xf32>
    %330 = vector.broadcast %329 : vector<8x1xf32> to vector<8x8xf32>
    %331 = arith.mulf %330, %3 : vector<8x8xf32>
    %332 = arith.addf %328, %331 : vector<8x8xf32>
    %333 = vector.extract_strided_slice %8 {offsets = [0, 7], sizes = [8, 1], strides = [1, 1]} : vector<8x8xf32> to vector<8x1xf32>
    %334 = vector.broadcast %333 : vector<8x1xf32> to vector<8x8xf32>
    %335 = arith.mulf %334, %4 : vector<8x8xf32>
    %336 = arith.addf %332, %335 : vector<8x8xf32>
    %337 = arith.negf %336 : vector<8x8xf32>
    %338 = math.exp %337 : vector<8x8xf32>
    %cst_38 = arith.constant 1.000000e+00 : f32
    %339 = vector.broadcast %cst_38 : f32 to vector<8x8xf32>
    %340 = arith.addf %339, %338 : vector<8x8xf32>
    %341 = arith.divf %339, %340 : vector<8x8xf32>
    %342 = vector.extract_strided_slice %341 {offsets = [0, 0], sizes = [8, 2], strides = [1, 1]} : vector<8x8xf32> to vector<8x2xf32>
    %343 = vector.extract_strided_slice %341 {offsets = [0, 2], sizes = [8, 2], strides = [1, 1]} : vector<8x8xf32> to vector<8x2xf32>
    %344 = vector.extract_strided_slice %341 {offsets = [0, 4], sizes = [8, 2], strides = [1, 1]} : vector<8x8xf32> to vector<8x2xf32>
    %cst_39 = arith.constant 2.000000e+00 : f32
    %345 = vector.broadcast %cst_39 : f32 to vector<8x2xf32>
    %346 = arith.mulf %345, %344 : vector<8x2xf32>
    %cst_40 = arith.constant 1.000000e+00 : f32
    %347 = vector.broadcast %cst_40 : f32 to vector<8x2xf32>
    %348 = arith.subf %346, %347 : vector<8x2xf32>
    %349 = vector.extract_strided_slice %341 {offsets = [0, 6], sizes = [8, 2], strides = [1, 1]} : vector<8x8xf32> to vector<8x2xf32>
    %350 = arith.mulf %343, %309 : vector<8x2xf32>
    %351 = arith.mulf %342, %348 : vector<8x2xf32>
    %352 = arith.addf %350, %351 : vector<8x2xf32>
    %353 = math.tanh %352 : vector<8x2xf32>
    %354 = arith.mulf %349, %353 : vector<8x2xf32>
    %355 = vector.extract_strided_slice %354 {offsets = [0, 0], sizes = [4, 2], strides = [1, 1]} : vector<8x2xf32> to vector<4x2xf32>
    %c24_41 = arith.constant 24 : index
    %c0_42 = arith.constant 0 : index
    %356 = vector.load %arg1[%c24_41, %c0_42] : memref<32x2xf32, #tpu.memory_space<vmem>>, vector<4x2xf32>
    tpu.vector_store %arg1[%c24_41, %c0_42], %355 {strides = array<i32>} : memref<32x2xf32, #tpu.memory_space<vmem>>, vector<4x2xf32>,
    %357 = vector.extract_strided_slice %354 {offsets = [0, 0], sizes = [8, 1], strides = [1, 1]} : vector<8x2xf32> to vector<8x1xf32>
    %358 = vector.broadcast %357 : vector<8x1xf32> to vector<8x8xf32>
    %359 = arith.mulf %358, %0 : vector<8x8xf32>
    %360 = arith.addf %5, %359 : vector<8x8xf32>
    %361 = vector.extract_strided_slice %354 {offsets = [0, 1], sizes = [8, 1], strides = [1, 1]} : vector<8x2xf32> to vector<8x1xf32>
    %362 = vector.broadcast %361 : vector<8x1xf32> to vector<8x8xf32>
    %363 = arith.mulf %362, %1 : vector<8x8xf32>
    %364 = arith.addf %360, %363 : vector<8x8xf32>
    %365 = vector.extract_strided_slice %354 {offsets = [4, 0], sizes = [4, 2], strides = [1, 1]} : vector<8x2xf32> to vector<4x2xf32>
    %366 = vector.extract_strided_slice %354 {offsets = [0, 0], sizes = [4, 2], strides = [1, 1]} : vector<8x2xf32> to vector<4x2xf32>
    %367 = tpu.concatenate %365, %366 in 0 : vector<4x2xf32>, vector<4x2xf32> -> vector<8x2xf32>
    %368 = vector.extract_strided_slice %367 {offsets = [0, 0], sizes = [8, 1], strides = [1, 1]} : vector<8x2xf32> to vector<8x1xf32>
    %369 = vector.broadcast %368 : vector<8x1xf32> to vector<8x8xf32>
    %370 = arith.mulf %369, %2 : vector<8x8xf32>
    %371 = arith.addf %364, %370 : vector<8x8xf32>
    %372 = vector.extract_strided_slice %367 {offsets = [0, 1], sizes = [8, 1], strides = [1, 1]} : vector<8x2xf32> to vector<8x1xf32>
    %373 = vector.broadcast %372 : vector<8x1xf32> to vector<8x8xf32>
    %374 = arith.mulf %373, %3 : vector<8x8xf32>
    %375 = arith.addf %371, %374 : vector<8x8xf32>
    %376 = arith.negf %375 : vector<8x8xf32>
    %377 = math.exp %376 : vector<8x8xf32>
    %cst_43 = arith.constant 1.000000e+00 : f32
    %378 = vector.broadcast %cst_43 : f32 to vector<8x8xf32>
    %379 = arith.addf %378, %377 : vector<8x8xf32>
    %380 = arith.divf %378, %379 : vector<8x8xf32>
    %381 = vector.extract_strided_slice %380 {offsets = [0, 0], sizes = [8, 2], strides = [1, 1]} : vector<8x8xf32> to vector<8x2xf32>
    %382 = vector.extract_strided_slice %380 {offsets = [0, 2], sizes = [8, 2], strides = [1, 1]} : vector<8x8xf32> to vector<8x2xf32>
    %383 = vector.extract_strided_slice %380 {offsets = [0, 4], sizes = [8, 2], strides = [1, 1]} : vector<8x8xf32> to vector<8x2xf32>
    %cst_44 = arith.constant 2.000000e+00 : f32
    %384 = vector.broadcast %cst_44 : f32 to vector<8x2xf32>
    %385 = arith.mulf %384, %383 : vector<8x2xf32>
    %cst_45 = arith.constant 1.000000e+00 : f32
    %386 = vector.broadcast %cst_45 : f32 to vector<8x2xf32>
    %387 = arith.subf %385, %386 : vector<8x2xf32>
    %388 = vector.extract_strided_slice %380 {offsets = [0, 6], sizes = [8, 2], strides = [1, 1]} : vector<8x8xf32> to vector<8x2xf32>
    %389 = arith.mulf %382, %352 : vector<8x2xf32>
    %390 = arith.mulf %381, %387 : vector<8x2xf32>
    %391 = arith.addf %389, %390 : vector<8x2xf32>
    %392 = math.tanh %391 : vector<8x2xf32>
    %393 = arith.mulf %388, %392 : vector<8x2xf32>
    %394 = vector.extract_strided_slice %393 {offsets = [0, 0], sizes = [4, 2], strides = [1, 1]} : vector<8x2xf32> to vector<4x2xf32>
    %c28 = arith.constant 28 : index
    %c0_46 = arith.constant 0 : index
    %395 = vector.load %arg1[%c28, %c0_46] : memref<32x2xf32, #tpu.memory_space<vmem>>, vector<4x2xf32>
    tpu.vector_store %arg1[%c28, %c0_46], %394 {strides = array<i32>} : memref<32x2xf32, #tpu.memory_space<vmem>>, vector<4x2xf32>,
    return
  }
}

</mosaic_0001>

<bundles_post_ra>
// kernel: _forward.1
= control target key start
LH: loop header
LB: loop body
LE: loop exit
PB: predicated region body
PF: predicated region fallthrough
CT: control target
= control target key end

     0   :  { %v722_v0 = vmov 0   ;;  %v723_v3 = vmov 1   ;;  %s724_s22 = smov 124   ;;  %s726_s23 = smov 4   ;;  %vm31_vm0 = vcmask 1043456   ;;  %vm148_vm1 = vcmask 11264   ;;  %s995_s0 = inlined_call_operand.vmem [shape: f32[64,8], index: 0, kind: input, shape index: {}]   ;;  %s996_s1 = inlined_call_operand.vmem [shape: f32[32,2], index: 1, kind: output, shape index: {}]  }
   0x1   :  { %626 = vset.pattern.permute.xlu0 %v722_v0  ;;  %v748_v1 = vld [vmem:[%s995_s0 + $0x30] sm:$0xff]  ;;  %628 = vset.pattern.permute.xlu1 %v722_v0  ;;  %v759_v4 = vld [vmem:[%s995_s0 + $0x38] sm:$0xff]  ;;  %v768_v5 = vld [vmem:[%s995_s0] sm:$0xff]  ;;  %s727_s24 = smov 122  }
   0x2   :  { %18 = vperm.xlu0 %626, %v748_v1   ;;  %v29_v2 = vrot.slane %v748_v1, 4  ;;  %v774_v9 = vld [vmem:[%s995_s0 + $0x28] sm:$0xff]  ;;  %v784_v11 = vld [vmem:[%s995_s0 + $0x10] sm:$0xff]  ;;  %v791_v16 = vld [vmem:[%s995_s0 + $0x18] sm:$0xff] }
   0x3   :  { %v779_v10 = vld [vmem:[%s995_s0 + $0x8] sm:$0xff]  ;;  %v798_v21 = vld [vmem:[%s995_s0 + $0x20] sm:$0xff]  ;;  %s725_s0 = smov 2  }
   0x4   :  { %35 = vperm.xlu1 %628, %v29_v2  }
   0x6   :  { %627 = vset.pattern.permute.xlu0 %v723_v3 }
   0x7   :  { %24 = vperm.xlu0 %627, %v748_v1  }
   0x8   :  { %629 = vset.pattern.permute.xlu1 %v723_v3 }
   0x9   :  { %41 = vperm.xlu1 %629, %v29_v2  }
   0xb   :  { %631 = vset.pattern.permute.xlu0 %v722_v0 }
   0xd   :  { %630 = vset.pattern.permute.xlu1 %v722_v0 }
   0xe   :  { %48 = vperm.xlu1 %630, %v759_v4  }
  0x12   :  { %632 = vset.pattern.permute.xlu1 %v723_v3 }
  0x7d   :  { %v19_v6 = vpop.permute.xlu0 %18 }
  0x7e   :  { %v21_v7 = vmul.f32 %v19_v6, %v768_v5 }
  0x7f   :  { %v36_v8 = vpop.permute.xlu1 %35 }
  0x80   :  { %v22_v13 = vadd.f32 %v21_v7, %v774_v9  ;;  %v38_v17 = vmul.f32 %v36_v8, %v784_v11 }
  0x82   :  { %v25_v12 = vpop.permute.xlu0 %24 }
  0x83   :  { %v27_v14 = vmul.f32 %v25_v12, %v779_v10  ;;  %v728_v12 = vmov 6  }
  0x84   :  { %v42_v15 = vpop.permute.xlu1 %41 }
  0x85   :  { %v28_v18 = vadd.f32 %v27_v14, %v22_v13  ;;  %v44_v20 = vmul.f32 %v42_v15, %v791_v16  ;;  %v729_v13 = vmov 7  }
  0x87   :  { %v39_v19 = vadd.f32 %v38_v17, %v28_v18  ;;  %v730_v18 = vmov 2  }
  0x89   :  { %v45_v22 = vadd.f32 %v44_v20, %v39_v19  ;;  %v49_v23 = vpop.permute.xlu1 %48 }
  0x8a   :  { %v51_v24 = vmul.f32 %v49_v23, %v798_v21 }
  0x8c   :  { %v52_v25 = vadd.f32 %v51_v24, %v45_v22 }
  0x8e   :  { %v596_v26 = vmul.f32 -1.442695, %v52_v25 }
  0x90   :  { %668 = vpow2.f32 %v596_v26 }
  0x9d   :  { %v669_v27 = vpop.eup %668 }
  0x9e   :  { %v56_v28 = vadd.f32 1.0, %v669_v27 }
  0xa0   :  { %670 = vrcp.f32 %v56_v28 }
  0xad   :  { %v671_v29 = vpop.eup %670 }
  0xae   :  { %v59_v30 = vmul.f32 2.0, %v671_v29  ;;  %v61_v34 = vmul.f32 %v671_v29, %v748_v1 }
  0xb0   :  { %v597_v31 = vadd.f32 -1.0, %v59_v30 }
  0xb2   :  { %63 = vrot.lane.b32.xlu0 %v597_v31, %s724_s22 }
 0x124   :  { %v64_v32 = vpop.permute.xlu0 %63 }
 0x125   :  { %v66_v33 = vmul.f32 %v671_v29, %v64_v32 }
 0x127   :  { %68 = vrot.lane.b32.xlu1 %v66_v33, %s725_s0 }
 0x199   :  { %v69_v35 = vpop.permute.xlu1 %68 }
 0x19a   :  { %v71_v36 = vadd.f32 %v69_v35, %v61_v34 }
 0x19c   :  { %672 = vtanh.f32 %v71_v36 }
 0x1a9   :  { %v673_v37 = vpop.eup %672 }
 0x1aa   :  { %74 = vrot.lane.b32.xlu0 %v673_v37, %s726_s23 }
 0x21c   :  { %v75_v38 = vpop.permute.xlu0 %74 }
 0x21d   :  { %v77_v39 = vmul.f32 %v671_v29, %v75_v38 }
 0x21f   :  { %79 = vrot.lane.b32.xlu1 %v77_v39, %s727_s24 }
 0x291   :  { %v80_v40 = vpop.permute.xlu1 %79 }
 0x292   :  { %v82_v41 = vsel %vm31_vm0, %v748_v1, %v80_v40 }
 0x293   :  { %92 = vperm.xlu1 %632, %v82_v41   ;;  %86 = vperm.xlu0 %631, %v82_v41   ;;  %v97_v42 = vrot.slane %v82_v41, 4 }
 0x297   :  { %633 = vset.pattern.permute.xlu1 %v722_v0  ;;  %634 = vset.pattern.permute.xlu0 %v723_v3 }
 0x298   :  { %108 = vperm.xlu0 %634, %v97_v42   ;;  %102 = vperm.xlu1 %633, %v97_v42  }
 0x29c   :  { %635 = vset.pattern.permute.xlu1 %v723_v3  ;;  %v83_v3 = vsel %vm31_vm0, %v748_v1, %v71_v36  ;;  %636 = vset.pattern.permute.xlu0 %v728_v12 }
 0x29d   :  { %114 = vperm.xlu1 %635, %v759_v4  }
 0x2a1   :  { %637 = vset.pattern.permute.xlu1 %v729_v13 }
 0x30e   :  { %v93_v43 = vpop.permute.xlu1 %92  ;;  %v87_v44 = vpop.permute.xlu0 %86 }
 0x30f   :  { %v89_v45 = vmul.f32 %v87_v44, %v768_v5  ;;  %v95_v46 = vmul.f32 %v93_v43, %v779_v10 }
 0x311   :  { %v90_v47 = vadd.f32 %v89_v45, %v774_v9 }
 0x313   :  { %v109_v48 = vpop.permute.xlu0 %108  ;;  %v96_v49 = vadd.f32 %v95_v46, %v90_v47  ;;  %v103_v50 = vpop.permute.xlu1 %102 }
 0x314   :  { %v105_v51 = vmul.f32 %v103_v50, %v784_v11  ;;  %v111_v52 = vmul.f32 %v109_v48, %v791_v16  ;;  %v731_v50 = vmov 3  }
 0x316   :  { %v106_v53 = vadd.f32 %v105_v51, %v96_v49 }
 0x318   :  { %v112_v54 = vadd.f32 %v111_v52, %v106_v53  ;;  %v115_v55 = vpop.permute.xlu1 %114 }
 0x319   :  { %v117_v56 = vmul.f32 %v115_v55, %v798_v21 }
 0x31b   :  { %v118_v57 = vadd.f32 %v117_v56, %v112_v54 }
 0x31d   :  { %v598_v58 = vmul.f32 -1.442695, %v118_v57 }
 0x31f   :  { %674 = vpow2.f32 %v598_v58 }
 0x32c   :  { %v675_v59 = vpop.eup %674 }
 0x32d   :  { %v122_v60 = vadd.f32 1.0, %v675_v59 }
 0x32f   :  { %676 = vrcp.f32 %v122_v60 }
 0x33c   :  { %v677_v61 = vpop.eup %676 }
 0x33d   :  { %v125_v62 = vmul.f32 2.0, %v677_v61  ;;  %v127_v6 = vmul.f32 %v677_v61, %v83_v3 }
 0x33f   :  { %v599_v63 = vadd.f32 -1.0, %v125_v62 }
 0x341   :  { %129 = vrot.lane.b32.xlu1 %v599_v63, %s724_s22 }
 0x3b3   :  { %v130_v0 = vpop.permute.xlu1 %129 }
 0x3b4   :  { %v132_v2 = vmul.f32 %v677_v61, %v130_v0 }
 0x3b6   :  { %134 = vrot.lane.b32.xlu0 %v132_v2, %s725_s0 }
 0x428   :  { %v135_v7 = vpop.permute.xlu0 %134 }
 0x429   :  { %v137_v8 = vadd.f32 %v135_v7, %v127_v6 }
 0x42b   :  { %678 = vtanh.f32 %v137_v8 }
 0x438   :  { %v679_v14 = vpop.eup %678 }
 0x439   :  { %140 = vrot.lane.b32.xlu1 %v679_v14, %s726_s23 }
 0x4ab   :  { %v141_v15 = vpop.permute.xlu1 %140 }
 0x4ac   :  { %v825_v17 = vmul.f32 %v677_v61, %v141_v15 }
 0x4ae   :  { %157 = vperm.xlu1 %637, %v825_v17   ;;  %151 = vperm.xlu0 %636, %v825_v17   ;;  %v162_v1 = vrot.slane %v825_v17, 4 }
 0x4b2   :  { %638 = vset.pattern.permute.xlu1 %v728_v12  ;;  %639 = vset.pattern.permute.xlu0 %v729_v13 }
 0x4b3   :  { %173 = vperm.xlu0 %639, %v162_v1   ;;  %167 = vperm.xlu1 %638, %v162_v1  }
 0x4b7   :  { %640 = vset.pattern.permute.xlu1 %v730_v18  ;;  %641 = vset.pattern.permute.xlu0 %v728_v12 }
 0x4b8   :  { %179 = vperm.xlu1 %640, %v759_v4  }
 0x4bc   :  { %642 = vset.pattern.permute.xlu1 %v729_v13 }
 0x529   :  { %v158_v19 = vpop.permute.xlu1 %157  ;;  %v152_v20 = vpop.permute.xlu0 %151 }
 0x52a   :  { %v154_v22 = vmul.f32 %v152_v20, %v768_v5  ;;  %v160_v23 = vmul.f32 %v158_v19, %v779_v10 }
 0x52c   :  { %v155_v24 = vadd.f32 %v154_v22, %v774_v9 }
 0x52e   :  { %v174_v25 = vpop.permute.xlu0 %173  ;;  %v161_v26 = vadd.f32 %v160_v23, %v155_v24  ;;  %v168_v27 = vpop.permute.xlu1 %167 }
 0x52f   :  { %v170_v28 = vmul.f32 %v168_v27, %v784_v11  ;;  %v176_v29 = vmul.f32 %v174_v25, %v791_v16  ;;  %v732_v27 = vmov 4  }
 0x531   :  { %v171_v30 = vadd.f32 %v170_v28, %v161_v26 }
 0x533   :  { %v177_v31 = vadd.f32 %v176_v29, %v171_v30  ;;  %v180_v32 = vpop.permute.xlu1 %179 }
 0x534   :  { %v182_v33 = vmul.f32 %v180_v32, %v798_v21 }
 0x536   :  { %v183_v34 = vadd.f32 %v182_v33, %v177_v31 }
 0x538   :  { %v600_v35 = vmul.f32 -1.442695, %v183_v34 }
 0x53a   :  { %680 = vpow2.f32 %v600_v35 }
 0x547   :  { %v681_v36 = vpop.eup %680 }
 0x548   :  { %v187_v37 = vadd.f32 1.0, %v681_v36 }
 0x54a   :  { %682 = vrcp.f32 %v187_v37 }
 0x557   :  { %v683_v38 = vpop.eup %682 }
 0x558   :  { %v190_v39 = vmul.f32 2.0, %v683_v38  ;;  %v192_v43 = vmul.f32 %v683_v38, %v137_v8 }
 0x55a   :  { %v601_v40 = vadd.f32 -1.0, %v190_v39 }
 0x55c   :  { %194 = vrot.lane.b32.xlu1 %v601_v40, %s724_s22 }
 0x5ce   :  { %v195_v41 = vpop.permute.xlu1 %194 }
 0x5cf   :  { %v197_v42 = vmul.f32 %v683_v38, %v195_v41 }
 0x5d1   :  { %199 = vrot.lane.b32.xlu0 %v197_v42, %s725_s0 }
 0x643   :  { %v200_v44 = vpop.permute.xlu0 %199 }
 0x644   :  { %v202_v45 = vadd.f32 %v200_v44, %v192_v43 }
 0x646   :  { %684 = vtanh.f32 %v202_v45 }
 0x653   :  { %v685_v46 = vpop.eup %684 }
 0x654   :  { %205 = vrot.lane.b32.xlu1 %v685_v46, %s726_s23 }
 0x6c6   :  { %v206_v47 = vpop.permute.xlu1 %205 }
 0x6c7   :  { %v844_v48 = vmul.f32 %v683_v38, %v206_v47 }
 0x6c9   :  { %221 = vperm.xlu1 %642, %v844_v48   ;;  %215 = vperm.xlu0 %641, %v844_v48   ;;  %v226_v49 = vrot.slane %v844_v48, 4 }
 0x6cd   :  { %643 = vset.pattern.permute.xlu1 %v728_v12  ;;  %644 = vset.pattern.permute.xlu0 %v729_v13 }
 0x6ce   :  { %237 = vperm.xlu0 %644, %v226_v49   ;;  %231 = vperm.xlu1 %643, %v226_v49  }
 0x6d2   :  { %645 = vset.pattern.permute.xlu1 %v731_v50  ;;  %646 = vset.pattern.permute.xlu0 %v728_v12 }
 0x6d3   :  { %243 = vperm.xlu1 %645, %v759_v4  }
 0x6d7   :  { %647 = vset.pattern.permute.xlu1 %v729_v13 }
 0x744   :  { %v222_v51 = vpop.permute.xlu1 %221  ;;  %v216_v52 = vpop.permute.xlu0 %215 }
 0x745   :  { %v218_v53 = vmul.f32 %v216_v52, %v768_v5  ;;  %v224_v54 = vmul.f32 %v222_v51, %v779_v10 }
 0x747   :  { %v219_v55 = vadd.f32 %v218_v53, %v774_v9 }
 0x749   :  { %v238_v56 = vpop.permute.xlu0 %237  ;;  %v225_v57 = vadd.f32 %v224_v54, %v219_v55  ;;  %v232_v58 = vpop.permute.xlu1 %231 }
 0x74a   :  { %v234_v59 = vmul.f32 %v232_v58, %v784_v11  ;;  %v240_v60 = vmul.f32 %v238_v56, %v791_v16 }
 0x74c   :  { %v235_v61 = vadd.f32 %v234_v59, %v225_v57  ;;  %v733_v59 = vmov 5  }
 0x74e   :  { %v241_v62 = vadd.f32 %v240_v60, %v235_v61  ;;  %v244_v63 = vpop.permute.xlu1 %243 }
 0x74f   :  { %v246_v0 = vmul.f32 %v244_v63, %v798_v21 }
 0x751   :  { %v247_v2 = vadd.f32 %v246_v0, %v241_v62 }
 0x753   :  { %v602_v3 = vmul.f32 -1.442695, %v247_v2 }
 0x755   :  { %686 = vpow2.f32 %v602_v3 }
 0x762   :  { %v687_v6 = vpop.eup %686 }
 0x763   :  { %v251_v7 = vadd.f32 1.0, %v687_v6 }
 0x765   :  { %688 = vrcp.f32 %v251_v7 }
 0x772   :  { %v689_v8 = vpop.eup %688 }
 0x773   :  { %v254_v14 = vmul.f32 2.0, %v689_v8  ;;  %v256_v19 = vmul.f32 %v689_v8, %v202_v45 }
 0x775   :  { %v603_v15 = vadd.f32 -1.0, %v254_v14 }
 0x777   :  { %258 = vrot.lane.b32.xlu1 %v603_v15, %s724_s22 }
 0x7e9   :  { %v259_v1 = vpop.permute.xlu1 %258 }
 0x7ea   :  { %v261_v18 = vmul.f32 %v689_v8, %v259_v1 }
 0x7ec   :  { %263 = vrot.lane.b32.xlu0 %v261_v18, %s725_s0 }
 0x85e   :  { %v264_v20 = vpop.permute.xlu0 %263 }
 0x85f   :  { %v266_v22 = vadd.f32 %v264_v20, %v256_v19 }
 0x861   :  { %690 = vtanh.f32 %v266_v22 }
 0x86e   :  { %v691_v23 = vpop.eup %690 }
 0x86f   :  { %269 = vrot.lane.b32.xlu1 %v691_v23, %s726_s23 }
 0x8e1   :  { %v270_v24 = vpop.permute.xlu1 %269 }
 0x8e2   :  { %v863_v25 = vmul.f32 %v689_v8, %v270_v24 }
 0x8e4   :  { %285 = vperm.xlu1 %647, %v863_v25   ;;  %279 = vperm.xlu0 %646, %v863_v25   ;;  %v290_v26 = vrot.slane %v863_v25, 4 }
 0x8e8   :  { %648 = vset.pattern.permute.xlu1 %v728_v12  ;;  %649 = vset.pattern.permute.xlu0 %v729_v13 }
 0x8e9   :  { %301 = vperm.xlu0 %649, %v290_v26   ;;  %295 = vperm.xlu1 %648, %v290_v26  }
 0x8ed   :  { %650 = vset.pattern.permute.xlu1 %v732_v27  ;;  %651 = vset.pattern.permute.xlu0 %v728_v12 }
 0x8ee   :  { %307 = vperm.xlu1 %650, %v759_v4  }
 0x8f2   :  { %652 = vset.pattern.permute.xlu1 %v729_v13 }
 0x95f   :  { %v286_v28 = vpop.permute.xlu1 %285  ;;  %v280_v29 = vpop.permute.xlu0 %279 }
 0x960   :  { %v282_v30 = vmul.f32 %v280_v29, %v768_v5  ;;  %v288_v31 = vmul.f32 %v286_v28, %v779_v10 }
 0x962   :  { %v283_v32 = vadd.f32 %v282_v30, %v774_v9 }
 0x964   :  { %v302_v33 = vpop.permute.xlu0 %301  ;;  %v289_v34 = vadd.f32 %v288_v31, %v283_v32  ;;  %v296_v35 = vpop.permute.xlu1 %295 }
 0x965   :  { %v298_v36 = vmul.f32 %v296_v35, %v784_v11  ;;  %v304_v37 = vmul.f32 %v302_v33, %v791_v16 }
 0x967   :  { %v299_v38 = vadd.f32 %v298_v36, %v289_v34 }
 0x969   :  { %v305_v39 = vadd.f32 %v304_v37, %v299_v38  ;;  %v308_v40 = vpop.permute.xlu1 %307 }
 0x96a   :  { %v310_v41 = vmul.f32 %v308_v40, %v798_v21 }
 0x96c   :  { %v311_v42 = vadd.f32 %v310_v41, %v305_v39 }
 0x96e   :  { %v604_v43 = vmul.f32 -1.442695, %v311_v42 }
 0x970   :  { %692 = vpow2.f32 %v604_v43 }
 0x97d   :  { %v693_v44 = vpop.eup %692 }
 0x97e   :  { %v315_v45 = vadd.f32 1.0, %v693_v44 }
 0x980   :  { %694 = vrcp.f32 %v315_v45 }
 0x98d   :  { %v695_v46 = vpop.eup %694 }
 0x98e   :  { %v318_v47 = vmul.f32 2.0, %v695_v46  ;;  %v320_v52 = vmul.f32 %v695_v46, %v266_v22 }
 0x990   :  { %v605_v49 = vadd.f32 -1.0, %v318_v47 }
 0x992   :  { %322 = vrot.lane.b32.xlu1 %v605_v49, %s724_s22 }
 0xa04   :  { %v323_v50 = vpop.permute.xlu1 %322 }
 0xa05   :  { %v325_v51 = vmul.f32 %v695_v46, %v323_v50 }
 0xa07   :  { %327 = vrot.lane.b32.xlu0 %v325_v51, %s725_s0 }
 0xa79   :  { %v328_v53 = vpop.permute.xlu0 %327 }
 0xa7a   :  { %v330_v54 = vadd.f32 %v328_v53, %v320_v52 }
 0xa7c   :  { %696 = vtanh.f32 %v330_v54 }
 0xa89   :  { %v697_v55 = vpop.eup %696 }
 0xa8a   :  { %333 = vrot.lane.b32.xlu1 %v697_v55, %s726_s23 }
 0xafc   :  { %v334_v56 = vpop.permute.xlu1 %333 }
 0xafd   :  { %v882_v57 = vmul.f32 %v695_v46, %v334_v56 }
 0xaff   :  { %349 = vperm.xlu1 %652, %v882_v57   ;;  %343 = vperm.xlu0 %651, %v882_v57   ;;  %v354_v58 = vrot.slane %v882_v57, 4 }
 0xb03   :  { %653 = vset.pattern.permute.xlu1 %v728_v12  ;;  %654 = vset.pattern.permute.xlu0 %v729_v13 }
 0xb04   :  { %365 = vperm.xlu0 %654, %v354_v58   ;;  %359 = vperm.xlu1 %653, %v354_v58  }
 0xb08   :  { %655 = vset.pattern.permute.xlu1 %v733_v59  ;;  %656 = vset.pattern.permute.xlu0 %v728_v12 }
 0xb09   :  { %371 = vperm.xlu1 %655, %v759_v4  }
 0xb0d   :  { %657 = vset.pattern.permute.xlu1 %v729_v13 }
 0xb7a   :  { %v350_v60 = vpop.permute.xlu1 %349  ;;  %v344_v61 = vpop.permute.xlu0 %343 }
 0xb7b   :  { %v346_v62 = vmul.f32 %v344_v61, %v768_v5  ;;  %v352_v63 = vmul.f32 %v350_v60, %v779_v10 }
 0xb7d   :  { %v347_v0 = vadd.f32 %v346_v62, %v774_v9 }
 0xb7f   :  { %v366_v2 = vpop.permute.xlu0 %365  ;;  %v353_v3 = vadd.f32 %v352_v63, %v347_v0  ;;  %v360_v6 = vpop.permute.xlu1 %359 }
 0xb80   :  { %v362_v7 = vmul.f32 %v360_v6, %v784_v11  ;;  %v368_v8 = vmul.f32 %v366_v2, %v791_v16 }
 0xb82   :  { %v363_v14 = vadd.f32 %v362_v7, %v353_v3 }
 0xb84   :  { %v369_v15 = vadd.f32 %v368_v8, %v363_v14  ;;  %v372_v1 = vpop.permute.xlu1 %371 }
 0xb85   :  { %v374_v18 = vmul.f32 %v372_v1, %v798_v21 }
 0xb87   :  { %v375_v19 = vadd.f32 %v374_v18, %v369_v15 }
 0xb89   :  { %v606_v20 = vmul.f32 -1.442695, %v375_v19 }
 0xb8b   :  { %698 = vpow2.f32 %v606_v20 }
 0xb98   :  { %v699_v22 = vpop.eup %698 }
 0xb99   :  { %v379_v23 = vadd.f32 1.0, %v699_v22 }
 0xb9b   :  { %700 = vrcp.f32 %v379_v23 }
 0xba8   :  { %v701_v24 = vpop.eup %700 }
 0xba9   :  { %v382_v26 = vmul.f32 2.0, %v701_v24  ;;  %v384_v30 = vmul.f32 %v701_v24, %v330_v54 }
 0xbab   :  { %v607_v27 = vadd.f32 -1.0, %v382_v26 }
 0xbad   :  { %386 = vrot.lane.b32.xlu1 %v607_v27, %s724_s22 }
 0xc1f   :  { %v387_v28 = vpop.permute.xlu1 %386 }
 0xc20   :  { %v389_v29 = vmul.f32 %v701_v24, %v387_v28 }
 0xc22   :  { %391 = vrot.lane.b32.xlu0 %v389_v29, %s725_s0 }
 0xc94   :  { %v392_v31 = vpop.permute.xlu0 %391 }
 0xc95   :  { %v394_v32 = vadd.f32 %v392_v31, %v384_v30 }
 0xc97   :  { %702 = vtanh.f32 %v394_v32 }
 0xca4   :  { %v703_v33 = vpop.eup %702 }
 0xca5   :  { %397 = vrot.lane.b32.xlu1 %v703_v33, %s726_s23 }
 0xd17   :  { %v398_v34 = vpop.permute.xlu1 %397 }
 0xd18   :  { %v901_v35 = vmul.f32 %v701_v24, %v398_v34 }
 0xd1a   :  { %413 = vperm.xlu1 %657, %v901_v35   ;;  %407 = vperm.xlu0 %656, %v901_v35   ;;  %v418_v36 = vrot.slane %v901_v35, 4 }
 0xd1e   :  { %658 = vset.pattern.permute.xlu1 %v728_v12  ;;  %659 = vset.pattern.permute.xlu0 %v729_v13 }
 0xd1f   :  { %429 = vperm.xlu0 %659, %v418_v36   ;;  %423 = vperm.xlu1 %658, %v418_v36  }
 0xd23   :  { %435 = vperm.xlu1 %658, %v759_v4   ;;  %660 = vset.pattern.permute.xlu0 %v728_v12 }
 0xd27   :  { %661 = vset.pattern.permute.xlu1 %v729_v13 }
 0xd95   :  { %v414_v37 = vpop.permute.xlu1 %413  ;;  %v408_v38 = vpop.permute.xlu0 %407 }
 0xd96   :  { %v410_v39 = vmul.f32 %v408_v38, %v768_v5  ;;  %v416_v40 = vmul.f32 %v414_v37, %v779_v10 }
 0xd98   :  { %v411_v41 = vadd.f32 %v410_v39, %v774_v9 }
 0xd9a   :  { %v430_v42 = vpop.permute.xlu0 %429  ;;  %v417_v43 = vadd.f32 %v416_v40, %v411_v41  ;;  %v424_v44 = vpop.permute.xlu1 %423 }
 0xd9b   :  { %v426_v45 = vmul.f32 %v424_v44, %v784_v11  ;;  %v432_v46 = vmul.f32 %v430_v42, %v791_v16 }
 0xd9d   :  { %v427_v47 = vadd.f32 %v426_v45, %v417_v43 }
 0xd9e   :  { %v436_v49 = vpop.permute.xlu1 %435 }
 0xd9f   :  { %v433_v50 = vadd.f32 %v432_v46, %v427_v47  ;;  %v438_v51 = vmul.f32 %v436_v49, %v798_v21 }
 0xda1   :  { %v439_v52 = vadd.f32 %v438_v51, %v433_v50 }
 0xda3   :  { %v608_v53 = vmul.f32 -1.442695, %v439_v52 }
 0xda5   :  { %704 = vpow2.f32 %v608_v53 }
 0xdb2   :  { %v705_v54 = vpop.eup %704 }
 0xdb3   :  { %v443_v55 = vadd.f32 1.0, %v705_v54 }
 0xdb5   :  { %706 = vrcp.f32 %v443_v55 }
 0xdc2   :  { %v707_v56 = vpop.eup %706 }
 0xdc3   :  { %v446_v58 = vmul.f32 2.0, %v707_v56  ;;  %v448_v62 = vmul.f32 %v707_v56, %v394_v32 }
 0xdc5   :  { %v609_v59 = vadd.f32 -1.0, %v446_v58 }
 0xdc7   :  { %450 = vrot.lane.b32.xlu1 %v609_v59, %s724_s22 }
 0xe39   :  { %v451_v60 = vpop.permute.xlu1 %450 }
 0xe3a   :  { %v453_v61 = vmul.f32 %v707_v56, %v451_v60 }
 0xe3c   :  { %455 = vrot.lane.b32.xlu0 %v453_v61, %s725_s0 }
 0xeae   :  { %v456_v63 = vpop.permute.xlu0 %455 }
 0xeaf   :  { %v458_v0 = vadd.f32 %v456_v63, %v448_v62 }
 0xeb1   :  { %708 = vtanh.f32 %v458_v0 }
 0xebe   :  { %v709_v2 = vpop.eup %708 }
 0xebf   :  { %461 = vrot.lane.b32.xlu1 %v709_v2, %s726_s23 }
 0xf31   :  { %v462_v3 = vpop.permute.xlu1 %461 }
 0xf32   :  { %v920_v6 = vmul.f32 %v707_v56, %v462_v3 }
 0xf34   :  { %477 = vperm.xlu1 %661, %v920_v6   ;;  %471 = vperm.xlu0 %660, %v920_v6   ;;  %v482_v7 = vrot.slane %v920_v6, 4 }
 0xf38   :  { %662 = vset.pattern.permute.xlu1 %v728_v12  ;;  %663 = vset.pattern.permute.xlu0 %v729_v13 }
 0xf39   :  { %493 = vperm.xlu0 %663, %v482_v7   ;;  %487 = vperm.xlu1 %662, %v482_v7  }
 0xf3d   :  { %664 = vset.pattern.permute.xlu1 %v729_v13  ;;  %665 = vset.pattern.permute.xlu0 %v728_v12 }
 0xf3e   :  { %499 = vperm.xlu1 %664, %v759_v4  }
 0xfaf   :  { %v478_v8 = vpop.permute.xlu1 %477  ;;  %v472_v14 = vpop.permute.xlu0 %471 }
 0xfb0   :  { %v474_v15 = vmul.f32 %v472_v14, %v768_v5  ;;  %v480_v1 = vmul.f32 %v478_v8, %v779_v10 }
 0xfb2   :  { %v475_v18 = vadd.f32 %v474_v15, %v774_v9 }
 0xfb4   :  { %v494_v19 = vpop.permute.xlu0 %493  ;;  %v481_v20 = vadd.f32 %v480_v1, %v475_v18  ;;  %v488_v22 = vpop.permute.xlu1 %487 }
 0xfb5   :  { %v490_v23 = vmul.f32 %v488_v22, %v784_v11  ;;  %v496_v24 = vmul.f32 %v494_v19, %v791_v16 }
 0xfb7   :  { %v491_v26 = vadd.f32 %v490_v23, %v481_v20 }
 0xfb9   :  { %v497_v27 = vadd.f32 %v496_v24, %v491_v26  ;;  %v500_v28 = vpop.permute.xlu1 %499 }
 0xfba   :  { %v502_v4 = vmul.f32 %v500_v28, %v798_v21 }
 0xfbc   :  { %v503_v29 = vadd.f32 %v502_v4, %v497_v27 }
 0xfbe   :  { %v610_v30 = vmul.f32 -1.442695, %v503_v29 }
 0xfc0   :  { %710 = vpow2.f32 %v610_v30 }
 0xfcd   :  { %v711_v31 = vpop.eup %710 }
 0xfce   :  { %v507_v32 = vadd.f32 1.0, %v711_v31 }
 0xfd0   :  { %712 = vrcp.f32 %v507_v32 }
 0xfdd   :  { %v713_v33 = vpop.eup %712 }
 0xfde   :  { %v510_v34 = vmul.f32 2.0, %v713_v33  ;;  %v512_v39 = vmul.f32 %v713_v33, %v458_v0 }
 0xfe0   :  { %v611_v36 = vadd.f32 -1.0, %v510_v34 }
 0xfe2   :  { %514 = vrot.lane.b32.xlu1 %v611_v36, %s724_s22 }
0x1054   :  { %v515_v37 = vpop.permute.xlu1 %514 }
0x1055   :  { %v517_v38 = vmul.f32 %v713_v33, %v515_v37 }
0x1057   :  { %519 = vrot.lane.b32.xlu0 %v517_v38, %s725_s0 }
0x10c9   :  { %v520_v40 = vpop.permute.xlu0 %519 }
0x10ca   :  { %v522_v41 = vadd.f32 %v520_v40, %v512_v39 }
0x10cc   :  { %714 = vtanh.f32 %v522_v41 }
0x10d9   :  { %v715_v21 = vpop.eup %714 }
0x10da   :  { %525 = vrot.lane.b32.xlu1 %v715_v21, %s726_s23 }
0x114c   :  { %v526_v42 = vpop.permute.xlu1 %525 }
0x114d   :  { %v528_v43 = vmul.f32 %v713_v33, %v526_v42 }
0x114f   :  { %541 = vperm.xlu1 %664, %v528_v43   ;;  %535 = vperm.xlu0 %665, %v528_v43   ;;  %v546_v44 = vrot.slane %v528_v43, 4 }
0x1153   :  { %666 = vset.pattern.permute.xlu1 %v728_v12  ;;  %667 = vset.pattern.permute.xlu0 %v729_v13 }
0x1154   :  { %557 = vperm.xlu0 %667, %v546_v44   ;;  %551 = vperm.xlu1 %666, %v546_v44  }
0x11ca   :  { %v542_v45 = vpop.permute.xlu1 %541  ;;  %v536_v46 = vpop.permute.xlu0 %535 }
0x11cb   :  { %v538_v47 = vmul.f32 %v536_v46, %v768_v5  ;;  %v544_v49 = vmul.f32 %v542_v45, %v779_v10 }
0x11cd   :  { %v539_v50 = vadd.f32 %v538_v47, %v774_v9 }
0x11cf   :  { %v558_v51 = vpop.permute.xlu0 %557  ;;  %v545_v52 = vadd.f32 %v544_v49, %v539_v50  ;;  %v552_v53 = vpop.permute.xlu1 %551 }
0x11d0   :  { %v554_v54 = vmul.f32 %v552_v53, %v784_v11  ;;  %v560_v55 = vmul.f32 %v558_v51, %v791_v16 }
0x11d2   :  { %v555_v12 = vadd.f32 %v554_v54, %v545_v52 }
0x11d4   :  { %v561_v56 = vadd.f32 %v560_v55, %v555_v12 }
0x11d6   :  { %v612_v13 = vmul.f32 -1.442695, %v561_v56 }
0x11d8   :  { %716 = vpow2.f32 %v612_v13 }
0x11e5   :  { %v717_v58 = vpop.eup %716 }
0x11e6   :  { %v565_v59 = vadd.f32 1.0, %v717_v58 }
0x11e8   :  { %718 = vrcp.f32 %v565_v59 }
0x11f5   :  { %v719_v60 = vpop.eup %718 }
0x11f6   :  { %v568_v5 = vmul.f32 2.0, %v719_v60  ;;  %v570_v11 = vmul.f32 %v719_v60, %v522_v41 }
0x11f8   :  { %v613_v61 = vadd.f32 -1.0, %v568_v5 }
0x11fa   :  { %572 = vrot.lane.b32.xlu1 %v613_v61, %s724_s22 }
0x126c   :  { %v573_v9 = vpop.permute.xlu1 %572 }
0x126d   :  { %v575_v10 = vmul.f32 %v719_v60, %v573_v9 }
0x126f   :  { %577 = vrot.lane.b32.xlu1 %v575_v10, %s725_s0 }
0x1273   :  { %145 = vrot.lane.b32.xlu1 %v825_v17, %s727_s24 }
0x1277   :  { %274 = vrot.lane.b32.xlu1 %v863_v25, %s727_s24 }
0x127b   :  { %402 = vrot.lane.b32.xlu1 %v901_v35, %s727_s24 }
0x127f   :  { %530 = vrot.lane.b32.xlu1 %v528_v43, %s727_s24 }
0x12e1   :  { %v578_v16 = vpop.permute.xlu1 %577 }
0x12e2   :  { %v580_v62 = vadd.f32 %v578_v16, %v570_v11 }
0x12e4   :  { %720 = vtanh.f32 %v580_v62 }
0x12e5   :  { %v146_v63 = vpop.permute.xlu1 %145 }
0x12e6   :  { %149 = vst.msk [vmem:[%s996_s1] sm:$0xf] %vm148_vm1, %v146_v63 }
0x12e9   :  { %v275_v17 = vpop.permute.xlu1 %274 }
0x12ea   :  { %277 = vst.msk [vmem:[%s996_s1 + $0x8] sm:$0xf] %vm148_vm1, %v275_v17 }
0x12ed   :  { %v403_v25 = vpop.permute.xlu1 %402 }
0x12ee   :  { %405 = vst.msk [vmem:[%s996_s1 + $0x10] sm:$0xf] %vm148_vm1, %v403_v25 }
0x12f1   :  { %v721_v35 = vpop.eup %720  ;;  %v531_v0 = vpop.permute.xlu1 %530 }
0x12f2   :  { %533 = vst.msk [vmem:[%s996_s1 + $0x18] sm:$0xf] %vm148_vm1, %v531_v0  ;;  %583 = vrot.lane.b32.xlu0 %v721_v35, %s726_s23 }
0x12f6   :  { %210 = vrot.lane.b32.xlu0 %v844_v48, %s727_s24 }
0x12fa   :  { %338 = vrot.lane.b32.xlu0 %v882_v57, %s727_s24 }
0x12fe   :  { %466 = vrot.lane.b32.xlu0 %v920_v6, %s727_s24 }
0x1364   :  { %v584_v2 = vpop.permute.xlu0 %583 }
0x1365   :  { %v586_v3 = vmul.f32 %v719_v60, %v584_v2 }
0x1367   :  { %588 = vrot.lane.b32.xlu0 %v586_v3, %s727_s24 }
0x1368   :  { %v211_v7 = vpop.permute.xlu0 %210 }
0x1369   :  { %213 = vst.msk [vmem:[%s996_s1 + $0x4] sm:$0xf] %vm148_vm1, %v211_v7 }
0x136c   :  { %v339_v8 = vpop.permute.xlu0 %338 }
0x136d   :  { %341 = vst.msk [vmem:[%s996_s1 + $0xc] sm:$0xf] %vm148_vm1, %v339_v8 }
0x1370   :  { %v467_v48 = vpop.permute.xlu0 %466 }
0x1371   :  { %469 = vst.msk [vmem:[%s996_s1 + $0x14] sm:$0xf] %vm148_vm1, %v467_v48 }
0x13d9   :  { %v589_v57 = vpop.permute.xlu0 %588 }
0x13da   :  { %591 = vst.msk [vmem:[%s996_s1 + $0x1c] sm:$0xf] %vm148_vm1, %v589_v57 }

</bundles_post_ra>
